<compile_context>
chip_gen: v6e
topology: v6e:2x2x1
jax: 0.10.0
libtpu: 0.0.40
codegen_flags: <defaults>
</compile_context>

<pallas_src>
import functools

import jax
import jax.numpy as jnp
from jax.experimental import pallas as pl
from jax.experimental.pallas import tpu as pltpu

_LANE = 128
_CHUNK_BUDGET_BYTES = 128 * 1024     # per-chunk f32 working set (vreg file ~256 KiB)


def _round_up(x, m):
    return (x + m - 1) // m * m


def _round_down(x, m):
    return x // m * m


def _pick_chunk(n, d, metric):
    """Lane width of the in-kernel sub-chunk (multiple of 128, vreg-sized)."""
    live = 4 if metric == "l1" else 2            # live (n, chunk) f32 arrays per chunk
    c = _CHUNK_BUDGET_BYTES // (live * 4 * max(n, 1))
    c = max(_LANE, min(2048, _round_down(c, _LANE)))
    # No point in a chunk wider than the (128-rounded) feature dim itself.
    return max(_LANE, min(c, _round_up(d, _LANE)))


# ---------------------------------------------------------------------------
# Kernel: grid = (num_parts, k_steps).  Axis 0 is "parallel" (both TCs on
# v7x), axis 1 streams D tiles ("arbitrary" reduction).  Each grid point
# accumulates into its partition's (1, n, n_out) output block.
# ---------------------------------------------------------------------------
def _diversity_accum_kernel(layer_ref, out_ref, *, metric, n, n_out, d_tile,
                            chunk, true_d, k_steps, ragged):
    p = pl.program_id(0)
    k = pl.program_id(1)

    @pl.when(k == 0)
    def _init():
        out_ref[...] = jnp.zeros_like(out_ref)

    gk = p * k_steps + k          # global reduction step (may overshoot -> fully masked)
    base = gk * d_tile            # first feature column covered by this tile
    n_chunks = d_tile // chunk

    def body(c, acc):
        col0 = pl.multiple_of(c * chunk, chunk)
        x = layer_ref[:, pl.ds(col0, chunk)]
        if ragged:
            # Mask columns beyond the true feature dim (ragged last tile and
            # the duplicate tiles created by the 2-way parallel split).
            lane = jax.lax.broadcasted_iota(jnp.int32, (n, chunk), 1)
            valid = (base + c * chunk + lane) < true_d
            x = jnp.where(valid, x, jnp.zeros_like(x))

        if metric == "l1":
            xf = x.astype(jnp.float32)
            parts = []
            for o in range(1, n_out + 1):
                # xr[i] = xf[(i + o) % n]  (static slices: direction unambiguous)
                xr = jnp.concatenate([xf[o:, :], xf[:o, :]], axis=0)
                parts.append(jnp.sum(jnp.abs(xf - xr), axis=1, keepdims=True))
            return acc + jnp.concatenate(parts, axis=1)          # (n, n//2)

        # l2 / cosine: gram accumulation on the MXU; contract the feature axis
        # of x with itself (no explicit transpose is materialised).
        return acc + jax.lax.dot_general(
            x, x, dimension_numbers=(((1,), (1,)), ((), ())),
            preferred_element_type=jnp.float32)                  # (n, n)

    acc = jax.lax.fori_loop(0, n_chunks, body,
                            jnp.zeros((n, n_out), jnp.float32))
    out_ref[...] += acc[None]


# ---------------------------------------------------------------------------
# Wrapper.
# ---------------------------------------------------------------------------
def diversity_loss(noises, layer, metric="l2", step_bytes=None):
    """JAX/Pallas equivalent of DiversityLoss(metric)(noises, layer)."""
    if metric not in ("l1", "l2", "cosine"):
        raise ValueError(metric)
    if layer.ndim > 2:
        layer = layer.reshape(layer.shape[0], -1)        # NCHW -> (N, C*H*W)
    n, d = layer.shape
    n2, dn = noises.shape
    assert n == n2, "noises and layer must share the batch dimension"

    if n < 2:
        # No off-diagonal pairs: every pairwise distance is 0 -> exp(0) = 1.
        return jnp.exp(jnp.float32(0.0))

    itemsize = jnp.dtype(layer.dtype).itemsize
    chunk = _pick_chunk(n, d, metric)

    # Bytes of `layer` streamed per grid step: big enough to amortise the
    # ~0.35 us per-step cost, derived from the chip's VMEM capacity.
    if step_bytes is None:
        try:
            vmem_cap = int(pltpu.get_tpu_info().vmem_capacity_bytes)
        except Exception:
            vmem_cap = 128 * 1024 * 1024
        step_bytes = max(4 << 20, min(16 << 20, vmem_cap // 8))

    d_cover = _round_up(d, chunk)
    d_tile = max(chunk, _round_down(step_bytes // (n * itemsize), chunk))
    d_tile = min(d_tile, d_cover)
    k_total = pl.cdiv(d, d_tile)
    num_parts = 2 if k_total >= 2 else 1       # leading "parallel" axis (v7x: 2 TCs)
    k_steps = pl.cdiv(k_total, num_parts)
    ragged = (d % d_tile != 0) or (num_parts * k_steps != k_total)

    n_out = (n // 2) if metric == "l1" else n

    kernel = functools.partial(
        _diversity_accum_kernel, metric=metric, n=n, n_out=n_out,
        d_tile=d_tile, chunk=chunk, true_d=d, k_steps=k_steps, ragged=ragged)

    def layer_index(p, k):
        # Clamp so duplicate tiles from the parallel split stay in bounds;
        # their contribution is zeroed by the in-kernel lane mask.
        return (0, jnp.minimum(p * k_steps + k, k_total - 1))

    vmem_limit = int(2 * n * d_tile * itemsize        # double-buffered layer tiles
                     + 2 * n * n_out * 4              # output accumulator blocks
                     + (4 << 20))                     # headroom (chunks, spills, misc)
    vmem_limit = min(max(vmem_limit, 16 << 20), 128 << 20)

    partial_acc = pl.pallas_call(
        kernel,
        out_shape=jax.ShapeDtypeStruct((num_parts, n, n_out), jnp.float32),
        grid_spec=pltpu.PrefetchScalarGridSpec(
            num_scalar_prefetch=0,
            grid=(num_parts, k_steps),
            in_specs=[pl.BlockSpec((n, d_tile), layer_index)],
            out_specs=pl.BlockSpec((1, n, n_out), lambda p, k: (p, 0, 0)),
        ),
        compiler_params=pltpu.CompilerParams(
            dimension_semantics=("parallel", "arbitrary"),
            vmem_limit_bytes=vmem_limit,
        ),
    )(layer)

    # ------ tiny O(n^2) finalize in plain JAX (off the critical path) ------
    acc = jnp.sum(partial_acc, axis=0)                 # (n, n_out) f32

    if metric == "l1":
        # acc[i, o-1] = sum_features |x_i - x_{(i+o) % n}| ; rebuild (n, n).
        off = (jnp.arange(n)[None, :] - jnp.arange(n)[:, None]) % n
        layer_dist = jnp.zeros((n, n), jnp.float32)
        for o in range(1, n_out + 1):
            vo = acc[:, o - 1]
            layer_dist = layer_dist + jnp.where(off == o, vo[:, None], 0.0)
            if (n - o) != o:
                layer_dist = layer_dist + jnp.where(off == n - o, vo[None, :], 0.0)
        layer_dist = layer_dist / d
    else:
        diag = jnp.diagonal(acc)
        if metric == "l2":
            layer_dist = jnp.maximum(diag[:, None] + diag[None, :] - 2.0 * acc,
                                     0.0) / d
        else:  # cosine
            denom = jnp.sqrt(jnp.maximum(diag[:, None] * diag[None, :], 0.0))
            layer_dist = 1.0 - acc / jnp.maximum(denom, 1e-8)

    nf = noises.astype(jnp.float32)
    noise_dist = jnp.mean((nf[:, None, :] - nf[None, :, :]) ** 2, axis=-1)

    return jnp.exp(jnp.mean(-noise_dist * layer_dist))


# ---------------------------------------------------------------------------
# Pure-JAX reference (direct transcription of the PyTorch module).
# ---------------------------------------------------------------------------
def _reference(noises, layer, metric):
    if layer.ndim > 2:
        layer = layer.reshape(layer.shape[0], -1)

    def pairwise(t, how):
        t1 = t[None, :, :]
        t2 = t[:, None, :]
        if how == "l1":
            return jnp.mean(jnp.abs(t1 - t2), axis=2)
        if how == "l2":
            return jnp.mean((t1 - t2) ** 2, axis=2)
        if how == "cosine":
            num = jnp.sum(t1 * t2, axis=2)
            den = jnp.maximum(
                jnp.linalg.norm(t1, axis=2) * jnp.linalg.norm(t2, axis=2), 1e-8)
            return 1.0 - num / den
        raise ValueError(how)

    layer_dist = pairwise(layer, metric)
    noise_dist = pairwise(noises, "l2")
    return jnp.exp(jnp.mean(-noise_dist * layer_dist))


if __name__ == "__main__":
    key = jax.random.PRNGKey(0)
    k1, k2, k3, k4 = jax.random.split(key, 4)

    N, D_NOISE = 8, 32
    noises = jax.random.normal(k1, (N, D_NOISE), dtype=jnp.float32)

    layer_a = jax.random.normal(k2, (N, 4, 16, 16), dtype=jnp.float32)    # D = 1024
    layer_b = jax.random.normal(k3, (N, 4, 32, 32), dtype=jnp.float32)    # D = 4096
    layer_c = jax.random.normal(k4, (N, 3, 7, 11), dtype=jnp.float32)     # D = 231 (ragged)
    layer_d = layer_b.astype(jnp.bfloat16)                                # native bf16 streaming

    cases = [
        ("D=1024/auto-tile", layer_a, None),
        ("D=4096/multi-step+parallel", layer_b, 32 * 1024),   # forces k_total>1 and the 2-way split
        ("D=231/ragged-mask", layer_c, None),
        ("D=4096/bf16", layer_d, 32 * 1024),
    ]
    for metric in ("l2", "l1", "cosine"):
        for name, lyr, sb in cases:
            got = jax.block_until_ready(
                diversity_loss(noises, lyr, metric=metric, step_bytes=sb))
            want = _reference(noises, lyr.astype(jnp.float32), metric)
            tol = 1e-3 if lyr.dtype == jnp.bfloat16 else 2e-4
            assert jnp.isfinite(got), f"non-finite result for {metric} / {name}"
            assert jnp.allclose(got, want, rtol=tol, atol=1e-5), (
                f"mismatch for metric={metric}, case={name}: {got} vs {want}")

    print("KERNEL_OK")
</pallas_src>

<mosaic_0001>
module attributes {stable_mosaic.version = 11 : i64} {
  func.func @_diversity_accum_kernel(%arg0: i32, %arg1: i32, %arg2: memref<8x1024xf32, #tpu.memory_space<vmem>>, %arg3: memref<1x8x8xf32, #tpu.memory_space<vmem>>) attributes {dimension_semantics = [#tpu.dimension_semantics<parallel>, #tpu.dimension_semantics<arbitrary>], iteration_bounds = array<i64: 1, 1>, scalar_prefetch = 0 : i64, scratch_operands = 0 : i64, tpu.core_type = #tpu.core_type<tc>, window_params = [{transform_indices = @transform_0, window_bounds = array<i64: 8, 1024>}, {transform_indices = @transform_1, window_bounds = array<i64: 1, 8, 8>}]} {
    %c0_i32 = arith.constant 0 : i32
    %0 = arith.cmpi eq, %arg1, %c0_i32 : i32
    %1 = arith.extui %0 : i1 to i32
    %c0_i32_0 = arith.constant 0 : i32
    %2 = arith.cmpi ne, %1, %c0_i32_0 : i32
    scf.if %2 {
      %cst_9 = arith.constant 0.000000e+00 : f32
      %14 = vector.broadcast %cst_9 : f32 to vector<1x8x8xf32>
      %c0_10 = arith.constant 0 : index
      %c0_11 = arith.constant 0 : index
      %c0_12 = arith.constant 0 : index
      %15 = vector.load %arg3[%c0_10, %c0_11, %c0_12] : memref<1x8x8xf32, #tpu.memory_space<vmem>>, vector<1x8x8xf32>
      tpu.vector_store %arg3[%c0_10, %c0_11, %c0_12], %14 {strides = array<i32>} : memref<1x8x8xf32, #tpu.memory_space<vmem>>, vector<1x8x8xf32>,
    } else {
    }
    %cst = arith.constant 0.000000e+00 : f32
    %3 = vector.broadcast %cst : f32 to vector<8x8xf32>
    %c0_i32_1 = arith.constant 0 : i32
    %c1024_i32 = arith.constant 1024 : i32
    %4 = arith.muli %c0_i32_1, %c1024_i32 : i32
    %5 = tpu.assume_multiple %4, 1024 : i32
    %c0 = arith.constant 0 : index
    %6 = arith.index_cast %5 : i32 to index
    %7 = vector.load %arg2[%c0, %6] : memref<8x1024xf32, #tpu.memory_space<vmem>>, vector<8x1024xf32>
    %cst_2 = arith.constant dense<0.000000e+00> : vector<8x8xf32>
    %8 = tpu.matmul %7, %7, %cst_2 {dimension_numbers = #tpu.dot_dimension_numbers<[1], [1], [0], [0], [0, 0, 1, 0], [], []>} : vector<8x1024xf32>, vector<8x1024xf32>, vector<8x8xf32> -> vector<8x8xf32>
    %9 = arith.addf %3, %8 : vector<8x8xf32>
    %c1_i32 = arith.constant 1 : i32
    %c0_3 = arith.constant 0 : index
    %c0_4 = arith.constant 0 : index
    %c0_5 = arith.constant 0 : index
    %10 = vector.load %arg3[%c0_3, %c0_4, %c0_5] : memref<1x8x8xf32, #tpu.memory_space<vmem>>, vector<1x8x8xf32>
    %11 = vector.shape_cast %9 : vector<8x8xf32> to vector<1x8x8xf32>
    %12 = arith.addf %10, %11 : vector<1x8x8xf32>
    %c0_6 = arith.constant 0 : index
    %c0_7 = arith.constant 0 : index
    %c0_8 = arith.constant 0 : index
    %13 = vector.load %arg3[%c0_6, %c0_7, %c0_8] : memref<1x8x8xf32, #tpu.memory_space<vmem>>, vector<1x8x8xf32>
    tpu.vector_store %arg3[%c0_6, %c0_7, %c0_8], %12 {strides = array<i32>} : memref<1x8x8xf32, #tpu.memory_space<vmem>>, vector<1x8x8xf32>,
    return
  }
  func.func @transform_0(%arg0: i32, %arg1: i32) -> (i32, i32) {
    %c1_i32 = arith.constant 1 : i32
    %0 = arith.muli %arg0, %c1_i32 : i32
    %1 = arith.addi %0, %arg1 : i32
    %c0_i32 = arith.constant 0 : i32
    %2 = arith.minsi %1, %c0_i32 : i32
    %c0_i32_0 = arith.constant 0 : i32
    %c0_i32_1 = arith.constant 0 : i32
    return %c0_i32_0, %2 : i32, i32
  }
  func.func @transform_1(%arg0: i32, %arg1: i32) -> (i32, i32, i32) {
    %c0_i32 = arith.constant 0 : i32
    %c0_i32_0 = arith.constant 0 : i32
    %c0_i32_1 = arith.constant 0 : i32
    return %arg0, %c0_i32, %c0_i32_0 : i32, i32, i32
  }
}

</mosaic_0001>

<bundles_post_ra>
// kernel: tpu_custom_call.1
= control target key start
LH: loop header
LB: loop body
LE: loop exit
PB: predicated region body
PF: predicated region fallthrough
CT: control target
= control target key end

     0   :  { %6 = vsyncpa [#allocation3], 0  ;;  %s414_s0 = inlined_call_operand.hbm [shape: f32[8,1024], index: 0, kind: input, shape index: {}]   ;;  %s415_s1 = inlined_call_operand.hbm [shape: f32[1,8,8], index: 1, kind: output, shape index: {}]  }
   0x1   :  { %7 = vsyncpa [#allocation4], 0  ;;  %s393_s6 = smov [#allocation2]  }
   0x2   :  { %s20_s7 = sshll.u32 %s393_s6, 4  ;;  %s21_s7 = int_to_ptr.vmem [resolvable:$true] %s20_s7 }
   0x3   :  { %s357_s8 = scalar_lea.vmem %s21_s7, 1024  ;;  %p362_p1 = scmp.lt.s32.totalorder %s21_s7, %s21_s7 }
   0x4   :  { %p358_p0 = scmp.ne.s32.totalorder %s21_s7, %s357_s8  ;;  %p363_p2 = scmp.lt.s32.totalorder %s357_s8, %s357_s8 }
   0x6   :  { %p364_p3 = por %p363_p2, %p362_p1 }
   0x8   :  { %p365_p4 = pnand %p364_p3, %p358_p0 }
   0xa   :  { %368 = shalt.err (!%p365_p4)
}
   0xb   :  { %23 = dma.hbm_to_vmem [thread:$0]  %s414_s0, 1024, %s21_s7, [#allocation3]  }
   0xc   :  { %389 = dma.done.wait [#allocation3], 1024  }
   0xd   :  { %390 = vsyncadd [#allocation3], 4294966272  ;;  %v38_v0 = vld [vmem:[#allocation2 + $0x8] sm:$0xff]  ;;  %v37_v1 = vld [vmem:[#allocation2] sm:$0xff]  ;;  %vm35_vm0 = vcmask 64512   ;;  %v394_v8 = vmov 0.0  }
   0xe   :  { %v40_v2 = vld [vmem:[#allocation2 + $0x18] sm:$0xff]  ;;  %75 = vmatprep.subr.mxu0 %v38_v0  ;;  %v39_v3 = vld [vmem:[#allocation2 + $0x10] sm:$0xff]  ;;  %v42_v4 = vld [vmem:[#allocation2 + $0x28] sm:$0xff]  ;;  %109 = vmatprep.mubr.f32.mxu0 %v38_v0  ;;  %36 = vst.msk [vmem:[#allocation5] sm:$0xff] %vm35_vm0, %v394_v8  ;;  %s395_s0 = smov [#allocation5]  }
   0xf   :  { %145 = vmatprep.subr.mxu1 %v40_v2  ;;  %76 = vmatpush1.xpose.msra.mxu0 %v37_v1  ;;  %v44_v5 = vld [vmem:[#allocation2 + $0x38] sm:$0xff]  ;;  %v41_v6 = vld [vmem:[#allocation2 + $0x20] sm:$0xff]  ;;  %v43_v7 = vld [vmem:[#allocation2 + $0x30] sm:$0xff]  ;;  %s335_s11 = sshll.u32 %s395_s0, 4  ;;  %s336_s11 = int_to_ptr.vmem [resolvable:$true] %s335_s11 }
  0x10   :  { %146 = vmatpush1.xpose.msra.mxu1 %v39_v3  ;;  %179 = vmatprep.mubr.f32.mxu1 %v40_v2  ;;  %s369_s12 = scalar_lea.vmem %s336_s11, 128  ;;  %p374_p6 = scmp.lt.s32.totalorder %s336_s11, %s336_s11 }
  0x11   :  { %215 = vmatprep.subr.mxu0 %v42_v4  ;;  %285 = vmatprep.subr.mxu1 %v44_v5  ;;  %p370_p5 = scmp.ne.s32.totalorder %s336_s11, %s369_s12  ;;  %p375_p7 = scmp.lt.s32.totalorder %s369_s12, %s369_s12 }
  0x12   :  { %110 = vmatmul.mubr.f32.vlgmr.msra.gmra.mxu0 %v37_v1 }
  0x13   :  { %180 = vmatmul.mubr.f32.vlgmr.msra.gmra.mxu1 %v39_v3  ;;  %216 = vmatpush1.xpose.msra.mxu0 %v41_v6  ;;  %p376_p8 = por %p375_p7, %p374_p6 }
  0x14   :  { %286 = vmatpush1.xpose.msra.mxu1 %v43_v7  ;;  %249 = vmatprep.mubr.f32.mxu0 %v42_v4 }
  0x15   :  { %319 = vmatprep.mubr.f32.mxu1 %v44_v5  ;;  %v325_v17 = vld [vmem:[#allocation5] sm:$0xff]  ;;  %p377_p9 = pnand %p376_p8, %p370_p5 }
  0x16   :  { %250 = vmatmul.mubr.f32.vlgmr.msra.gmra.mxu0 %v41_v6 }
  0x17   :  { %320 = vmatmul.mubr.f32.vlgmr.msra.gmra.mxu1 %v43_v7 }
  0xd2   :  { %v111_v9 = vpop.f32.mrf.mxu0 }
  0xd3   :  { %v181_v10 = vpop.f32.mrf.mxu1 }
  0xd4   :  { %v113_v11 = vpop.f32.mrf.mxu0  ;;  %v182_v13 = vadd.f32 %v181_v10, %v111_v9 }
  0xd5   :  { %v183_v12 = vpop.f32.mrf.mxu1 }
  0xd6   :  { %v251_v14 = vpop.f32.mrf.mxu0 }
  0xd7   :  { %v321_v15 = vpop.f32.mrf.mxu1  ;;  %v252_v16 = vadd.f32 %v251_v14, %v182_v13 }
  0xd8   :  { %v253_v18 = vpop.f32.mrf.mxu0 }
  0xd9   :  { %v323_v19 = vpop.f32.mrf.mxu1  ;;  %v322_v20 = vadd.f32 %v321_v15, %v252_v16 }
  0xdb   :  { %v326_v21 = vadd.f32 %v325_v17, %v322_v20 }
  0xdd   :  { %328 = vst.msk [vmem:[#allocation5] sm:$0xff] %vm35_vm0, %v326_v21 }
  0xde   :  { %380 = shalt.err (!%p377_p9)
}
  0xdf   :  { %338 = dma.vmem_to_hbm [thread:$0]  %s336_s11, 128, %s415_s1, [#allocation4]  }
  0xe0   :  { %391 = dma.done.wait [#allocation4], 128  }
  0xe1   :  { %392 = vsyncadd [#allocation4], 4294967168 }
  0xe2   :  { %342 = vsyncpa [#allocation3], 1 }
  0xe3   :  { %343 = vsyncpa [#allocation4], 1 }

</bundles_post_ra>
